<compile_context>
chip_gen: v7x
topology: tpu7x:2x2x1
jax: 0.10.0
libtpu: 0.0.40
codegen_flags: <defaults>
</compile_context>

<pallas_src>
import functools

import numpy as np
import jax
import jax.numpy as jnp
from jax import lax
from jax.experimental import pallas as pl
from jax.experimental.pallas import tpu as pltpu


def _round_up(x, m):
    return ((x + m - 1) // m) * m


def _choose_tile_n(n, c, itemsize):
    """Pick a batch tile: full (8-rounded) batch when small, else a 128-multiple
    sized so double-buffered input tiles + f32 intermediates stay ~<=24 MiB
    (safe for v7x's 64 MiB VMEM)."""
    n8 = _round_up(n, 8)
    if n8 <= 512:
        return n8                               # single tile == full batch dim
    per_row = c * (4 * itemsize + 8 * 4)        # 2 inputs x 2 bufs + f32 temps
    max_rows = max(128, (24 * 2**20) // per_row)
    tile = min(512, max_rows)
    return max(128, (tile // 128) * 128)        # lane-dense output blocks


def _jocor_tile_kernel(ys_ref, yt_ref, lbl_ref, out_ref, *, inv_T):
    ys = ys_ref[...].astype(jnp.float32)        # (TILE_N, C)
    yt = yt_ref[...].astype(jnp.float32)        # (TILE_N, C)
    lbl = lbl_ref[...]                          # (TILE_N, 1) int32
    tile_n, C = ys.shape

    class_ids = lax.broadcasted_iota(jnp.int32, (tile_n, C), 1)
    label_mask = class_ids == lbl               # reused for both CE terms

    def log_softmax(x):
        z = x - jnp.max(x, axis=1, keepdims=True)
        return z - jnp.log(jnp.sum(jnp.exp(z), axis=1, keepdims=True))

    def log_softmax_and_softmax(x):
        z = x - jnp.max(x, axis=1, keepdims=True)
        e = jnp.exp(z)                          # exp reused for lse AND softmax
        s = jnp.sum(e, axis=1, keepdims=True)
        return z - jnp.log(s), e / s

    ones_row = jnp.ones((1, C), jnp.float32)
    contract_last = (((1,), (1,)), ((), ()))    # (1,C) . (TILE_N,C)^T -> (1,TILE_N)

    def row_sum(x):
        # Class-axis reduction on the (otherwise idle) MXU; lane-major result.
        return lax.dot_general(ones_row, x, contract_last,
                               precision=lax.Precision.HIGHEST,
                               preferred_element_type=jnp.float32)

    # Hard-label cross entropy for student + teacher, per sample.
    lps = log_softmax(ys)
    lpt = log_softmax(yt)
    ce_sum = -row_sum(jnp.where(label_mask, lps + lpt, 0.0))      # (1, TILE_N)

    # Temperature-scaled per-row KL sums.
    lps_T, ps_T = log_softmax_and_softmax(ys * inv_T)
    lpt_T, pt_T = log_softmax_and_softmax(yt * inv_T)
    diff = lpt_T - lps_T
    kl_s_row = row_sum(pt_T * diff)             # sum_c p_t (log p_t - log p_s)
    kl_t_row = -row_sum(ps_T * diff)            # sum_c p_s (log p_s - log p_t)

    # Single dense full-tile store (rows 3..7 are unused padding).
    out_ref[...] = jnp.concatenate(
        [ce_sum, kl_s_row, kl_t_row,
         jnp.zeros((out_ref.shape[0] - 3, tile_n), jnp.float32)], axis=0)


def jocor_per_sample_parts(y_s, y_t, y, *, T, tile_n=None):
    """Pallas pass: per-sample (ce_s+ce_t, kl_s_rowsum, kl_t_rowsum), each (N,)."""
    N, C = y_s.shape
    itemsize = jnp.dtype(y_s.dtype).itemsize
    if tile_n is None:
        tile_n = _choose_tile_n(N, C, itemsize)
    n_pad = _round_up(N, tile_n)
    grid = n_pad // tile_n

    if n_pad != N:
        y_s = jnp.pad(y_s, ((0, n_pad - N), (0, 0)))
        y_t = jnp.pad(y_t, ((0, n_pad - N), (0, 0)))
        y = jnp.pad(y, ((0, n_pad - N),))
    lbl = y.astype(jnp.int32).reshape(n_pad, 1)

    kernel = functools.partial(_jocor_tile_kernel, inv_T=1.0 / float(T))

    # Explicit VMEM budget: double-buffered input tiles + f32 intermediates + outs.
    tile_in_bytes = tile_n * C * itemsize
    tile_f32_bytes = tile_n * C * 4
    needed = (2 * 2 * tile_in_bytes + 8 * tile_f32_bytes
              + 2 * (tile_n * 4 + 8 * tile_n * 4))
    vmem_limit = int(min(48 * 2**20, max(16 * 2**20, needed + needed // 2)))

    cost = pl.CostEstimate(
        flops=int(16 * n_pad * C),
        transcendentals=int(4 * n_pad * C + 6 * n_pad),
        bytes_accessed=int(2 * n_pad * C * itemsize + n_pad * 4 + 8 * n_pad * 4),
    )

    out = pl.pallas_call(
        kernel,
        out_shape=jax.ShapeDtypeStruct((8, n_pad), jnp.float32),
        grid_spec=pltpu.PrefetchScalarGridSpec(
            num_scalar_prefetch=0,
            grid=(grid,),
            in_specs=[
                pl.BlockSpec((tile_n, C), lambda i: (i, 0)),   # y_s (native dtype)
                pl.BlockSpec((tile_n, C), lambda i: (i, 0)),   # y_t (native dtype)
                pl.BlockSpec((tile_n, 1), lambda i: (i, 0)),   # labels
            ],
            out_specs=pl.BlockSpec((8, tile_n), lambda i: (0, i)),  # lane-dense
        ),
        compiler_params=pltpu.CompilerParams(
            dimension_semantics=("parallel",),     # megacore-shardable
            vmem_limit_bytes=vmem_limit,
        ),
        cost_estimate=cost,
    )(y_s, y_t, lbl)

    ce = out[0, :N]
    kl_s_rows = out[1, :N]
    kl_t_rows = out[2, :N]
    return ce, kl_s_rows, kl_t_rows


def jocor_per_sample_loss(y_s, y_t, y, *, co_lambda, T, tile_n=None):
    """Per-sample Jocor loss vector, shape (N,)."""
    ce, kl_s_rows, kl_t_rows = jocor_per_sample_parts(y_s, y_t, y, T=T, tile_n=tile_n)
    # NOTE: the original PyTorch kl_loss_compute is called with reduction='none'
    # (a truthy string) so it returns the *batch-mean* scalar; that batch mean is
    # taken here, outside the kernel, over the real (unpadded) batch.
    kl_s = (T * T) * jnp.mean(kl_s_rows)
    kl_t = (T * T) * jnp.mean(kl_t_rows)
    return (1.0 - co_lambda) * ce + co_lambda * (kl_s + kl_t)


class JocorLossPallas:
    def __init__(self, co_lambda, T, epochs, forget_rate, gradual, exponent):
        self.co_lambda = co_lambda
        self.T = T
        self.forget_scheduler = np.ones(epochs) * forget_rate
        self.forget_scheduler[:gradual] = np.linspace(0, forget_rate ** exponent, gradual)

    def __call__(self, y_s, y_t, y, epoch):
        loss_vec = jocor_per_sample_loss(y_s, y_t, y, co_lambda=self.co_lambda, T=self.T)
        remember_rate = 1.0 - self.forget_scheduler[epoch]
        num_remember = int(remember_rate * loss_vec.shape[0])
        # small-loss selection: sort ascending, keep num_remember smallest, mean.
        # TODO(synk): argsort/top-k has no clean Pallas TPU equivalent; done in plain JAX.
        loss_sorted = jnp.sort(loss_vec)
        return jnp.mean(loss_sorted[:num_remember])


def _reference_per_sample_loss(y_s, y_t, y, co_lambda, T):
    """Pure-JAX reference of the per-sample loss (for sanity checking)."""
    def log_softmax(x):
        m = jnp.max(x, axis=1, keepdims=True)
        z = x - m
        return z - jnp.log(jnp.sum(jnp.exp(z), axis=1, keepdims=True))

    N, C = y_s.shape
    onehot = jax.nn.one_hot(y, C, dtype=jnp.float32)
    ce_s = -jnp.sum(onehot * log_softmax(y_s), axis=1)
    ce_t = -jnp.sum(onehot * log_softmax(y_t), axis=1)
    lps_T = log_softmax(y_s / T)
    lpt_T = log_softmax(y_t / T)
    kl_s = T * T * jnp.mean(jnp.sum(jnp.exp(lpt_T) * (lpt_T - lps_T), axis=1))
    kl_t = T * T * jnp.mean(jnp.sum(jnp.exp(lps_T) * (lps_T - lpt_T), axis=1))
    return (1.0 - co_lambda) * (ce_s + ce_t) + co_lambda * (kl_s + kl_t)


if __name__ == "__main__":
    # synthetic config (stands in for cfg.*)
    CO_LAMBDA = 0.1
    T = 2.0
    EPOCHS = 10
    FORGET_RATE = 0.2
    GRADUAL = 5
    EXPONENT = 1.0
    epoch = 3

    # --- primary small check: batch=8, classes=16, f32 logits ------------------
    N, C = 8, 16
    key = jax.random.PRNGKey(0)
    k1, k2, k3 = jax.random.split(key, 3)
    y_s = jax.random.normal(k1, (N, C), dtype=jnp.float32)
    y_t = jax.random.normal(k2, (N, C), dtype=jnp.float32)
    y = jax.random.randint(k3, (N,), 0, C, dtype=jnp.int32)

    loss_mod = JocorLossPallas(CO_LAMBDA, T, EPOCHS, FORGET_RATE, GRADUAL, EXPONENT)
    loss = jax.block_until_ready(loss_mod(y_s, y_t, y, epoch))

    per_sample = jax.block_until_ready(
        jocor_per_sample_loss(y_s, y_t, y, co_lambda=CO_LAMBDA, T=T))
    ref = _reference_per_sample_loss(y_s, y_t, y, CO_LAMBDA, T)
    np.testing.assert_allclose(np.asarray(per_sample), np.asarray(ref),
                               rtol=1e-5, atol=1e-5)

    # --- secondary check: multi-tile path (batch padding, "parallel" grid axis)
    #     with bf16 logits passed through in their native dtype (f32 in-kernel).
    N2, C2 = 200, 144
    k4, k5, k6 = jax.random.split(jax.random.PRNGKey(1), 3)
    y_s2 = jax.random.normal(k4, (N2, C2), dtype=jnp.bfloat16)
    y_t2 = jax.random.normal(k5, (N2, C2), dtype=jnp.bfloat16)
    y2 = jax.random.randint(k6, (N2,), 0, C2, dtype=jnp.int32)
    per_sample2 = jax.block_until_ready(
        jocor_per_sample_loss(y_s2, y_t2, y2, co_lambda=CO_LAMBDA, T=T, tile_n=128))
    ref2 = _reference_per_sample_loss(y_s2.astype(jnp.float32),
                                      y_t2.astype(jnp.float32), y2, CO_LAMBDA, T)
    np.testing.assert_allclose(np.asarray(per_sample2), np.asarray(ref2),
                               rtol=1e-4, atol=1e-5)

    print("KERNEL_OK")
</pallas_src>

<mosaic_0001>
module attributes {stable_mosaic.version = 11 : i64} {
  func.func @_jocor_tile_kernel(%arg0: i32, %arg1: memref<8x16xf32, #tpu.memory_space<vmem>>, %arg2: memref<8x16xf32, #tpu.memory_space<vmem>>, %arg3: memref<8x1xi32, #tpu.memory_space<vmem>>, %arg4: memref<8x8xf32, #tpu.memory_space<vmem>>) attributes {dimension_semantics = [#tpu.dimension_semantics<parallel>], iteration_bounds = array<i64: 1>, scalar_prefetch = 0 : i64, scratch_operands = 0 : i64, tpu.core_type = #tpu.core_type<tc>, window_params = [{transform_indices = @transform_0, window_bounds = array<i64: 8, 16>}, {transform_indices = @transform_1, window_bounds = array<i64: 8, 16>}, {transform_indices = @transform_2, window_bounds = array<i64: 8, 1>}, {transform_indices = @transform_3, window_bounds = array<i64: 8, 8>}]} {
    %c0 = arith.constant 0 : index
    %c0_0 = arith.constant 0 : index
    %0 = vector.load %arg1[%c0, %c0_0] : memref<8x16xf32, #tpu.memory_space<vmem>>, vector<8x16xf32>
    %c0_1 = arith.constant 0 : index
    %c0_2 = arith.constant 0 : index
    %1 = vector.load %arg2[%c0_1, %c0_2] : memref<8x16xf32, #tpu.memory_space<vmem>>, vector<8x16xf32>
    %c0_3 = arith.constant 0 : index
    %c0_4 = arith.constant 0 : index
    %2 = vector.load %arg3[%c0_3, %c0_4] : memref<8x1xi32, #tpu.memory_space<vmem>>, vector<8x1xi32>
    %3 = tpu.iota {dimensions = array<i32: 1>} : vector<8x16xi32>
    %4 = vector.broadcast %2 : vector<8x1xi32> to vector<8x16xi32>
    %5 = arith.cmpi eq, %3, %4 : vector<8x16xi32>
    %cst = arith.constant 1.000000e+00 : f32
    %6 = vector.broadcast %cst : f32 to vector<1x16xf32>
    %cst_5 = arith.constant dense<0xFF800000> : vector<8xf32>
    %7 = vector.multi_reduction <maximumf>, %0, %cst_5 [1] : vector<8x16xf32> to vector<8xf32>
    %8 = vector.shape_cast %7 : vector<8xf32> to vector<8x1xf32>
    %9 = vector.broadcast %8 : vector<8x1xf32> to vector<8x16xf32>
    %10 = arith.subf %0, %9 : vector<8x16xf32>
    %11 = math.exp %10 : vector<8x16xf32>
    %cst_6 = arith.constant dense<0.000000e+00> : vector<8xf32>
    %12 = vector.multi_reduction <add>, %11, %cst_6 [1] : vector<8x16xf32> to vector<8xf32>
    %13 = vector.shape_cast %12 : vector<8xf32> to vector<8x1xf32>
    %14 = math.log %13 : vector<8x1xf32>
    %15 = vector.broadcast %14 : vector<8x1xf32> to vector<8x16xf32>
    %16 = arith.subf %10, %15 : vector<8x16xf32>
    %cst_7 = arith.constant dense<0xFF800000> : vector<8xf32>
    %17 = vector.multi_reduction <maximumf>, %1, %cst_7 [1] : vector<8x16xf32> to vector<8xf32>
    %18 = vector.shape_cast %17 : vector<8xf32> to vector<8x1xf32>
    %19 = vector.broadcast %18 : vector<8x1xf32> to vector<8x16xf32>
    %20 = arith.subf %1, %19 : vector<8x16xf32>
    %21 = math.exp %20 : vector<8x16xf32>
    %cst_8 = arith.constant dense<0.000000e+00> : vector<8xf32>
    %22 = vector.multi_reduction <add>, %21, %cst_8 [1] : vector<8x16xf32> to vector<8xf32>
    %23 = vector.shape_cast %22 : vector<8xf32> to vector<8x1xf32>
    %24 = math.log %23 : vector<8x1xf32>
    %25 = vector.broadcast %24 : vector<8x1xf32> to vector<8x16xf32>
    %26 = arith.subf %20, %25 : vector<8x16xf32>
    %27 = arith.addf %16, %26 : vector<8x16xf32>
    %cst_9 = arith.constant 0.000000e+00 : f32
    %28 = vector.broadcast %cst_9 : f32 to vector<8x16xf32>
    %29 = arith.select %5, %27, %28 : vector<8x16xi1>, vector<8x16xf32>
    %cst_10 = arith.constant dense<0.000000e+00> : vector<1x8xf32>
    %30 = tpu.matmul %6, %29, %cst_10 {dimension_numbers = #tpu.dot_dimension_numbers<[1], [1], [0], [0], [0, 0, 1, 0], [], []>, precision = #tpu.contract_precision<fp32>} : vector<1x16xf32>, vector<8x16xf32>, vector<1x8xf32> -> vector<1x8xf32>
    %cst_11 = arith.constant 0.000000e+00 : f32
    %31 = vector.broadcast %cst_11 : f32 to vector<1x8xf32>
    %32 = arith.subf %31, %30 : vector<1x8xf32>
    %cst_12 = arith.constant 5.000000e-01 : f32
    %33 = vector.broadcast %cst_12 : f32 to vector<8x16xf32>
    %34 = arith.mulf %0, %33 : vector<8x16xf32>
    %cst_13 = arith.constant dense<0xFF800000> : vector<8xf32>
    %35 = vector.multi_reduction <maximumf>, %34, %cst_13 [1] : vector<8x16xf32> to vector<8xf32>
    %36 = vector.shape_cast %35 : vector<8xf32> to vector<8x1xf32>
    %37 = vector.broadcast %36 : vector<8x1xf32> to vector<8x16xf32>
    %38 = arith.subf %34, %37 : vector<8x16xf32>
    %39 = math.exp %38 : vector<8x16xf32>
    %cst_14 = arith.constant dense<0.000000e+00> : vector<8xf32>
    %40 = vector.multi_reduction <add>, %39, %cst_14 [1] : vector<8x16xf32> to vector<8xf32>
    %41 = vector.shape_cast %40 : vector<8xf32> to vector<8x1xf32>
    %42 = math.log %41 : vector<8x1xf32>
    %43 = vector.broadcast %42 : vector<8x1xf32> to vector<8x16xf32>
    %44 = arith.subf %38, %43 : vector<8x16xf32>
    %45 = vector.broadcast %41 : vector<8x1xf32> to vector<8x16xf32>
    %46 = arith.divf %39, %45 : vector<8x16xf32>
    %cst_15 = arith.constant 5.000000e-01 : f32
    %47 = vector.broadcast %cst_15 : f32 to vector<8x16xf32>
    %48 = arith.mulf %1, %47 : vector<8x16xf32>
    %cst_16 = arith.constant dense<0xFF800000> : vector<8xf32>
    %49 = vector.multi_reduction <maximumf>, %48, %cst_16 [1] : vector<8x16xf32> to vector<8xf32>
    %50 = vector.shape_cast %49 : vector<8xf32> to vector<8x1xf32>
    %51 = vector.broadcast %50 : vector<8x1xf32> to vector<8x16xf32>
    %52 = arith.subf %48, %51 : vector<8x16xf32>
    %53 = math.exp %52 : vector<8x16xf32>
    %cst_17 = arith.constant dense<0.000000e+00> : vector<8xf32>
    %54 = vector.multi_reduction <add>, %53, %cst_17 [1] : vector<8x16xf32> to vector<8xf32>
    %55 = vector.shape_cast %54 : vector<8xf32> to vector<8x1xf32>
    %56 = math.log %55 : vector<8x1xf32>
    %57 = vector.broadcast %56 : vector<8x1xf32> to vector<8x16xf32>
    %58 = arith.subf %52, %57 : vector<8x16xf32>
    %59 = vector.broadcast %55 : vector<8x1xf32> to vector<8x16xf32>
    %60 = arith.divf %53, %59 : vector<8x16xf32>
    %61 = arith.subf %58, %44 : vector<8x16xf32>
    %62 = arith.mulf %60, %61 : vector<8x16xf32>
    %cst_18 = arith.constant dense<0.000000e+00> : vector<1x8xf32>
    %63 = tpu.matmul %6, %62, %cst_18 {dimension_numbers = #tpu.dot_dimension_numbers<[1], [1], [0], [0], [0, 0, 1, 0], [], []>, precision = #tpu.contract_precision<fp32>} : vector<1x16xf32>, vector<8x16xf32>, vector<1x8xf32> -> vector<1x8xf32>
    %64 = arith.mulf %46, %61 : vector<8x16xf32>
    %cst_19 = arith.constant dense<0.000000e+00> : vector<1x8xf32>
    %65 = tpu.matmul %6, %64, %cst_19 {dimension_numbers = #tpu.dot_dimension_numbers<[1], [1], [0], [0], [0, 0, 1, 0], [], []>, precision = #tpu.contract_precision<fp32>} : vector<1x16xf32>, vector<8x16xf32>, vector<1x8xf32> -> vector<1x8xf32>
    %cst_20 = arith.constant 0.000000e+00 : f32
    %66 = vector.broadcast %cst_20 : f32 to vector<1x8xf32>
    %67 = arith.subf %66, %65 : vector<1x8xf32>
    %cst_21 = arith.constant 0.000000e+00 : f32
    %68 = vector.broadcast %cst_21 : f32 to vector<5x8xf32>
    %69 = tpu.concatenate %32, %63, %67, %68 in 0 : vector<1x8xf32>, vector<1x8xf32>, vector<1x8xf32>, vector<5x8xf32> -> vector<8x8xf32>
    %c0_22 = arith.constant 0 : index
    %c0_23 = arith.constant 0 : index
    %70 = vector.load %arg4[%c0_22, %c0_23] : memref<8x8xf32, #tpu.memory_space<vmem>>, vector<8x8xf32>
    tpu.vector_store %arg4[%c0_22, %c0_23], %69 {strides = array<i32>} : memref<8x8xf32, #tpu.memory_space<vmem>>, vector<8x8xf32>,
    return
  }
  func.func @transform_0(%arg0: i32) -> (i32, i32) {
    %c0_i32 = arith.constant 0 : i32
    %c0_i32_0 = arith.constant 0 : i32
    return %arg0, %c0_i32 : i32, i32
  }
  func.func @transform_1(%arg0: i32) -> (i32, i32) {
    %c0_i32 = arith.constant 0 : i32
    %c0_i32_0 = arith.constant 0 : i32
    return %arg0, %c0_i32 : i32, i32
  }
  func.func @transform_2(%arg0: i32) -> (i32, i32) {
    %c0_i32 = arith.constant 0 : i32
    %c0_i32_0 = arith.constant 0 : i32
    return %arg0, %c0_i32 : i32, i32
  }
  func.func @transform_3(%arg0: i32) -> (i32, i32) {
    %c0_i32 = arith.constant 0 : i32
    %c0_i32_0 = arith.constant 0 : i32
    return %c0_i32, %arg0 : i32, i32
  }
}

</mosaic_0001>

<bundles_post_ra>
// kernel: tpu_custom_call.1
= control target key start
LH: loop header
LB: loop body
LE: loop exit
PB: predicated region body
PF: predicated region fallthrough
CT: control target
= control target key end

     0   :  { %8 = vsyncpa [#allocation3], 0  ;;  %s1874_s0 = inlined_call_operand.vmem [shape: f32[8,16], index: 0, kind: input, shape index: {}]   ;;  %s1875_s1 = inlined_call_operand.hbm [shape: f32[8,16], index: 1, kind: input, shape index: {}]   ;;  %s1876_s2 = inlined_call_operand.vmem [shape: s32[8,1], index: 2, kind: input, shape index: {}]   ;;  %s1877_s3 = inlined_call_operand.hbm [shape: f32[8,8], index: 3, kind: output, shape index: {}]  }
   0x1   :  { %9 = vsyncpa [#allocation4], 0  ;;  %s1716_s12 = smov [#allocation2]   ;;  %s1668_s16 = scalar_lea.hbm %s1875_s1, 128 }
   0x2   :  { %s18_s13 = sshll.u32 %s1716_s12, 4  ;;  %p1669_p0 = scmp.ne.s32.totalorder %s1875_s1, %s1668_s16  ;;  %s19_s13 = int_to_ptr.vmem [resolvable:$true] %s18_s13 }
   0x3   :  { %p1672_p1 = scmp.lt.u32.totalorder %s1668_s16, %s1875_s1 }
   0x5   :  { %p1674_p2 = pnand %p1672_p1, %p1669_p0 }
   0x7   :  { %1677 = shalt.err (!%p1674_p2)
}
   0x8   :  { %s1678_s21 = scalar_lea.vmem %s19_s13, 128  ;;  %p1683_p4 = scmp.lt.s32.totalorder %s19_s13, %s19_s13 }
   0x9   :  { %p1679_p3 = scmp.ne.s32.totalorder %s19_s13, %s1678_s21  ;;  %p1684_p5 = scmp.lt.s32.totalorder %s1678_s21, %s1678_s21 }
   0xb   :  { %p1685_p6 = por %p1684_p5, %p1683_p4 }
   0xd   :  { %p1686_p7 = pnand %p1685_p6, %p1679_p3 }
   0xf   :  { %1689 = shalt.err (!%p1686_p7)
}
  0x10   :  { %21 = dma.hbm_to_vmem [thread:$0]  %s1875_s1, 128, %s19_s13, [#allocation3]  }
  0x11   :  { %1712 = dma.done.wait [#allocation3], 128  }
  0x12   :  { %1713 = vsyncadd [#allocation3], 4294967168  ;;  %vm36_vm0 = vcmask 130048   ;;  %v27_v0 = vld [vmem:[%s1874_s0] sm:$0xff]  ;;  %v1717_v8 = vmov 0   ;;  %v1718_v30 = vmov 0.0   ;;  %v30_v37 = vlaneseq }
  0x13   :  { %v28_v1 = vld [vmem:[#allocation2] sm:$0xff]  ;;  %v37_v2 = vsel %vm36_vm0, %v27_v0, -inf  ;;  %v516_v3 = vmul.f32 0.5, %v27_v0  ;;  %1647 = vset.pattern.permute.xlu0 %v1717_v8  ;;  %1522 = vmatprep.subr.mxu1 %v1718_v30  ;;  %vm1719_vm1 = vmmov 0   ;;  %v64_v35 = vsel %vm36_vm0, 1.0, %v1717_v8 }
  0x14   :  { %v531_v4 = vmul.f32 0.5, %v28_v1  ;;  %38 = vmax.xlane.f32.xlu0 %v37_v2  ;;  %v49_v6 = vsel %vm36_vm0, %v28_v1, -inf  ;;  %v29_v29 = vld [vmem:[%s1876_s2] sm:$0xff]  ;;  %1537 = vmatprep.subr.mxu0 %v1718_v30  ;;  %v1781_v38 = vsub.f32 %v64_v35, %v64_v35  ;;  %v31_v41 = vand.u32 127, %v30_v37  ;;  %s1721_s2 = smov [#allocation5]  }
  0x15   :  { %v517_v5 = vsel %vm36_vm0, %v516_v3, -inf  ;;  %1524 = vmatprep.mubr.msk.f32.mxu1 %vm1719_vm1, %v1718_v30  ;;  %1539 = vmatprep.mubr.msk.f32.mxu0 %vm1719_vm1, %v1718_v30  ;;  %vm1454_vm3 = vcmask 1040384   ;;  %vm1456_vm4 = vcmask 1041408   ;;  %s1468_s26 = sshll.u32 %s1721_s2, 4  ;;  %vm1458_vm5 = vcmask 1042432   ;;  %s1469_s26 = int_to_ptr.vmem [resolvable:$true] %s1468_s26 }
  0x16   :  { %518 = vmax.xlane.f32.xlu1 %v517_v5  ;;  %v532_v7 = vsel %vm36_vm0, %v531_v4, -inf  ;;  %v1784_v45 = vand.u32 4294901760, %v1781_v38  ;;  %vm1460_vm6 = vcmask 64512   ;;  %s1690_s27 = scalar_lea.vmem %s1469_s26, 128  ;;  %p1695_p9 = scmp.lt.s32.totalorder %s1469_s26, %s1469_s26 }
  0x17   :  { %p1691_p8 = scmp.ne.s32.totalorder %s1469_s26, %s1690_s27  ;;  %p1696_p10 = scmp.lt.s32.totalorder %s1690_s27, %s1690_s27 }
  0x18   :  { %50 = vmax.xlane.f32.xlu0 %v49_v6  ;;  %v138_v54 = vsub.f32 %v1781_v38, %v1784_v45 }
  0x19   :  { %p1697_p11 = por %p1696_p10, %p1695_p9 }
  0x1a   :  { %533 = vmax.xlane.f32.xlu1 %v532_v7  ;;  %v139_v63 = vand.u32 4294901760, %v138_v54 }
  0x1b   :  { %p1698_p12 = pnand %p1697_p11, %p1691_p8 }
  0xa1   :  { %v39_v9 = vpop.xlane.xlu0 %38 }
  0xa2   :  { %v1761_v10 = vsub.f32 %v27_v0, %v39_v9 }
  0xa3   :  { %v519_v11 = vpop.xlane.xlu1 %518 }
  0xa4   :  { %v41_v12 = vmul.f32 1.442695, %v1761_v10  ;;  %v1764_v13 = vsub.f32 %v516_v3, %v519_v11 }
  0xa5   :  { %v51_v14 = vpop.xlane.xlu0 %50 }
  0xa6   :  { %1648 = vpow2.f32 %v41_v12  ;;  %v521_v15 = vmul.f32 1.442695, %v1764_v13  ;;  %v52_v16 = vsub.f32 %v28_v1, %v51_v14  ;;  %v1720_v12 = vmov 1.0  }
  0xa7   :  { %v534_v17 = vpop.xlane.xlu1 %533 }
  0xa8   :  { %1650 = vpow2.f32 %v521_v15  ;;  %v53_v18 = vmul.f32 1.442695, %v52_v16  ;;  %v535_v19 = vsub.f32 %v531_v4, %v534_v17 }
  0xaa   :  { %1652 = vpow2.f32 %v53_v18  ;;  %v536_v20 = vmul.f32 1.442695, %v535_v19 }
  0xac   :  { %1654 = vpow2.f32 %v536_v20 }
  0xb0   :  { %v1649_v21 = vpop.eup %1648 }
  0xb1   :  { %v43_v22 = vsel %vm36_vm0, %v1649_v21, 0.0 }
  0xb2   :  { %v1651_v23 = vpop.eup %1650  ;;  %44 = vadd.xlane.f32.xlu0 %v43_v22 }
  0xb3   :  { %v523_v24 = vsel %vm36_vm0, %v1651_v23, 0.0 }
  0xb4   :  { %v1653_v25 = vpop.eup %1652 }
  0xb5   :  { %v55_v26 = vsel %vm36_vm0, %v1653_v25, 0.0 }
  0xb6   :  { %v1655_v27 = vpop.eup %1654  ;;  %524 = vadd.xlane.f32.xlu0 %v523_v24  ;;  %56 = vadd.xlane.f32.xlu1 %v55_v26 }
  0xb7   :  { %v538_v28 = vsel %vm36_vm0, %v1655_v27, 0.0 }
  0xba   :  { %539 = vadd.xlane.f32.xlu1 %v538_v28 }
  0xcc   :  { %33 = vperm.xlu0 %1647, %v29_v29  }
 0x13f   :  { %v45_v31 = vpop.xlane.xlu0 %44 }
 0x140   :  { %1656 = vlog2.f32 %v45_v31 }
 0x143   :  { %v57_v32 = vpop.xlane.xlu1 %56  ;;  %v525_v33 = vpop.xlane.xlu0 %524 }
 0x144   :  { %1658 = vlog2.f32 %v57_v32 }
 0x145   :  { %1660 = vlog2.f32 %v525_v33 }
 0x147   :  { %v540_v34 = vpop.xlane.xlu1 %539 }
 0x148   :  { %1662 = vlog2.f32 %v540_v34 }
 0x149   :  { %1664 = vrcp.f32 %v525_v33 }
 0x14a   :  { %v1657_v36 = vpop.eup %1656  ;;  %1666 = vrcp.f32 %v540_v34 }
 0x14b   :  { %v47_v39 = vmul.f32 0.6931472, %v1657_v36  ;;  %v34_v44 = vpop.permute.xlu0 %33 }
 0x14c   :  { %vm35_vm2 = vcmp.eq.s32.totalorder %v31_v41, %v34_v44 }
 0x14d   :  { %v48_v46 = vsub.f32 %v1761_v10, %v47_v39 }
 0x14e   :  { %v1659_v40 = vpop.eup %1658 }
 0x14f   :  { %v1661_v42 = vpop.eup %1660  ;;  %v59_v43 = vmul.f32 0.6931472, %v1659_v40 }
 0x150   :  { %v527_v48 = vmul.f32 0.6931472, %v1661_v42 }
 0x151   :  { %v60_v47 = vsub.f32 %v52_v16, %v59_v43 }
 0x152   :  { %v1663_v49 = vpop.eup %1662  ;;  %v528_v55 = vsub.f32 %v1764_v13, %v527_v48 }
 0x153   :  { %v1665_v50 = vpop.eup %1664  ;;  %v542_v51 = vmul.f32 0.6931472, %v1663_v49  ;;  %v61_v52 = vadd.f32 %v60_v47, %v48_v46 }
 0x154   :  { %v1667_v53 = vpop.eup %1666  ;;  %v530_v59 = vmul.f32 %v1665_v50, %v1651_v23 }
 0x155   :  { %v543_v56 = vsub.f32 %v535_v19, %v542_v51  ;;  %v62_v57 = vsel %vm35_vm2, %v61_v52, 0.0  ;;  %v545_v60 = vmul.f32 %v1667_v53, %v1655_v27 }
 0x156   :  { %v67_v58 = vsel %vm36_vm0, %v62_v57, 0 }
 0x157   :  { %v546_v61 = vsub.f32 %v543_v56, %v528_v55  ;;  %v70_v62 = vand.u32 4294901760, %v67_v58 }
 0x159   :  { %v547_v0 = vmul.f32 %v546_v61, %v545_v60  ;;  %v997_v1 = vmul.f32 %v546_v61, %v530_v59  ;;  %v147_v2 = vsub.f32 %v67_v58, %v70_v62  ;;  %1523 = vmatpush3.xpose.msra.mxu1 %v70_v62  ;;  %1538 = vmatpush3.xpose.msra.mxu0 %v70_v62 }
 0x15a   :  { %1542 = vmatprep.subr.mxu0 %v1718_v30  ;;  %1527 = vmatprep.subr.mxu1 %v1718_v30 }
 0x15b   :  { %v148_v3 = vand.u32 4294901760, %v147_v2  ;;  %v549_v4 = vsel %vm36_vm0, %v547_v0, 0  ;;  %v999_v5 = vsel %vm36_vm0, %v997_v1, 0 }
 0x15c   :  { %1525 = vmatmul.mubr.f32.vlgmr.msra.gmra.mrb[0].mxu1 %v139_v63  ;;  %1540 = vmatmul.mubr.f32.vlgmr.msra.gmra.mrb[0].mxu0 %v1784_v45  ;;  %v1801_v8 = vand.u32 4294901760, %v549_v4  ;;  %v1002_v9 = vand.u32 4294901760, %v999_v5 }
 0x15d   :  { %1543 = vmatpush3.xpose.msra.mxu0 %v148_v3  ;;  %v149_v6 = vsub.f32 %v147_v2, %v148_v3  ;;  %1529 = vmatprep.mubr.msk.f32.mxu1 %vm1719_vm1, %v1718_v30 }
 0x15e   :  { %1544 = vmatprep.mubr.msk.f32.mxu0 %vm1719_vm1, %v1718_v30  ;;  %1547 = vmatprep.subr.mxu0 %v1718_v30  ;;  %v629_v10 = vsub.f32 %v549_v4, %v1801_v8  ;;  %v1079_v11 = vsub.f32 %v999_v5, %v1002_v9 }
 0x15f   :  { %v150_v7 = vand.u32 4294901760, %v149_v6 }
 0x160   :  { %v630_v13 = vand.u32 4294901760, %v629_v10  ;;  %v1080_v14 = vand.u32 4294901760, %v1079_v11 }
 0x161   :  { %1528 = vmatpush3.xpose.msra.mxu1 %v150_v7 }
 0x162   :  { %1532 = vmatprep.subr.mxu1 %v1718_v30  ;;  %v631_v15 = vsub.f32 %v629_v10, %v630_v13  ;;  %v1081_v16 = vsub.f32 %v1079_v11, %v1080_v14 }
 0x164   :  { %1530 = vmatmul.mubr.msk.f32.vlgmr.msra.gmra.mrb[0].mxu1 %vm36_vm0, %v1720_v12  ;;  %1545 = vmatmul.mubr.msk.f32.vlgmr.msra.gmra.mrb[0].mxu0 %vm36_vm0, %v1720_v12  ;;  %v632_v17 = vand.u32 4294901760, %v631_v15  ;;  %v1082_v18 = vand.u32 4294901760, %v1081_v16 }
 0x165   :  { %1548 = vmatpush3.xpose.msra.mxu0 %v70_v62  ;;  %1533 = vmatpush3.xpose.msra.mxu1 %v147_v2 }
 0x166   :  { %1534 = vmatprep.mubr.msk.f32.mxu1 %vm1719_vm1, %v1718_v30  ;;  %1549 = vmatprep.mubr.msk.f32.mxu0 %vm1719_vm1, %v1718_v30 }
 0x167   :  { %1552 = vmatprep.subr.mxu1 %v1718_v30  ;;  %1582 = vmatprep.subr.mxu0 %v1718_v30 }
 0x16c   :  { %1535 = vmatmul.mubr.f32.vlgmr.msra.gmra.mrb[0].mxu1 %v1781_v38  ;;  %1550 = vmatmul.mubr.msk.f32.vlgmr.msra.gmra.mrb[0].mxu0 %vm36_vm0, %v1720_v12 }
 0x16d   :  { %1553 = vmatpush3.xpose.msra.mxu1 %v1801_v8  ;;  %1583 = vmatpush3.xpose.msra.mxu0 %v1002_v9 }
 0x16e   :  { %1554 = vmatprep.mubr.msk.f32.mxu1 %vm1719_vm1, %v1718_v30  ;;  %1557 = vmatprep.subr.mxu1 %v1718_v30 }
 0x16f   :  { %1584 = vmatprep.mubr.msk.f32.mxu0 %vm1719_vm1, %v1718_v30  ;;  %1587 = vmatprep.subr.mxu0 %v1718_v30 }
 0x170   :  { %1555 = vmatmul.mubr.f32.vlgmr.msra.gmra.mrb[2].mxu1 %v139_v63  ;;  %1585 = vmatmul.mubr.f32.vlgmr.msra.gmra.mrb[2].mxu0 %v139_v63 }
 0x171   :  { %1558 = vmatpush3.xpose.msra.mxu1 %v632_v17  ;;  %1588 = vmatpush3.xpose.msra.mxu0 %v1082_v18 }
 0x172   :  { %1559 = vmatprep.mubr.msk.f32.mxu1 %vm1719_vm1, %v1718_v30  ;;  %1562 = vmatprep.subr.mxu1 %v1718_v30 }
 0x173   :  { %1589 = vmatprep.mubr.msk.f32.mxu0 %vm1719_vm1, %v1718_v30  ;;  %1592 = vmatprep.subr.mxu0 %v1718_v30 }
 0x178   :  { %1560 = vmatmul.mubr.msk.f32.vlgmr.msra.gmra.mrb[2].mxu1 %vm36_vm0, %v1720_v12  ;;  %1590 = vmatmul.mubr.msk.f32.vlgmr.msra.gmra.mrb[2].mxu0 %vm36_vm0, %v1720_v12 }
 0x179   :  { %1563 = vmatpush3.xpose.msra.mxu1 %v629_v10  ;;  %1593 = vmatpush3.xpose.msra.mxu0 %v1079_v11 }
 0x17a   :  { %1564 = vmatprep.mubr.msk.f32.mxu1 %vm1719_vm1, %v1718_v30  ;;  %1567 = vmatprep.subr.mxu1 %v1718_v30 }
 0x17b   :  { %1594 = vmatprep.mubr.msk.f32.mxu0 %vm1719_vm1, %v1718_v30  ;;  %1597 = vmatprep.subr.mxu0 %v1718_v30 }
 0x180   :  { %1565 = vmatmul.mubr.f32.vlgmr.msra.gmra.mrb[2].mxu1 %v1781_v38  ;;  %1595 = vmatmul.mubr.f32.vlgmr.msra.gmra.mrb[2].mxu0 %v1781_v38 }
 0x181   :  { %1568 = vmatpush3.xpose.msra.mxu1 %v1801_v8  ;;  %1598 = vmatpush3.xpose.msra.mxu0 %v1002_v9 }
 0x182   :  { %1569 = vmatprep.mubr.msk.f32.mxu1 %vm1719_vm1, %v1718_v30  ;;  %1572 = vmatprep.subr.mxu1 %v1718_v30 }
 0x183   :  { %1599 = vmatprep.mubr.msk.f32.mxu0 %vm1719_vm1, %v1718_v30  ;;  %1602 = vmatprep.subr.mxu0 %v1718_v30 }
 0x188   :  { %1570 = vmatmul.mubr.f32.vlgmr.msra.gmra.mrb[2].mxu1 %v1784_v45  ;;  %1600 = vmatmul.mubr.f32.vlgmr.msra.gmra.mrb[2].mxu0 %v1784_v45 }
 0x189   :  { %1573 = vmatpush3.xpose.msra.mxu1 %v630_v13  ;;  %1603 = vmatpush3.xpose.msra.mxu0 %v1080_v14 }
 0x18a   :  { %1574 = vmatprep.mubr.msk.f32.mxu1 %vm1719_vm1, %v1718_v30  ;;  %1577 = vmatprep.subr.mxu1 %v1718_v30 }
 0x18b   :  { %1604 = vmatprep.mubr.msk.f32.mxu0 %vm1719_vm1, %v1718_v30  ;;  %1607 = vmatprep.subr.mxu0 %v1718_v30 }
 0x190   :  { %1575 = vmatmul.mubr.msk.f32.vlgmr.msra.gmra.mrb[2].mxu1 %vm36_vm0, %v1720_v12  ;;  %1605 = vmatmul.mubr.msk.f32.vlgmr.msra.gmra.mrb[2].mxu0 %vm36_vm0, %v1720_v12 }
 0x191   :  { %1578 = vmatpush3.xpose.msra.mxu1 %v1801_v8  ;;  %1608 = vmatpush3.xpose.msra.mxu0 %v1002_v9 }
 0x192   :  { %1579 = vmatprep.mubr.msk.f32.mxu1 %vm1719_vm1, %v1718_v30  ;;  %1609 = vmatprep.mubr.msk.f32.mxu0 %vm1719_vm1, %v1718_v30 }
 0x198   :  { %1580 = vmatmul.mubr.msk.f32.vlgmr.msra.gmra.mrb[2].mxu1 %vm36_vm0, %v1720_v12  ;;  %1610 = vmatmul.mubr.msk.f32.vlgmr.msra.gmra.mrb[2].mxu0 %vm36_vm0, %v1720_v12 }
 0x23f   :  { %v291_v19 = vpop.f32.mrb[0].mxu1  ;;  %v511_v20 = vpop.f32.mrb[0].mxu0 }
 0x240   :  { %v1612_v21 = vadd.f32 %v511_v20, %v291_v19  ;;  %v1536_v22 = vpop.f32.mrb[1].mxu1  ;;  %v1551_v23 = vpop.f32.mrb[1].mxu0 }
 0x242   :  { %v515_v26 = vsub.f32 0.0, %v1612_v21 }
 0x26b   :  { %v993_v24 = vpop.f32.mrb[2].mxu1  ;;  %v1443_v25 = vpop.f32.mrb[2].mxu0 }
 0x26c   :  { %v1449_v27 = vrot.slane %v993_v24, 7  ;;  %v1447_v28 = vsub.f32 0.0, %v1443_v25  ;;  %v1581_v29 = vpop.f32.mrb[3].mxu1  ;;  %v1611_v31 = vpop.f32.mrb[3].mxu0 }
 0x26e   :  { %v1455_v30 = vsel %vm1454_vm3, %v515_v26, %v1449_v27  ;;  %v1452_v32 = vrot.slane %v1447_v28, 6 }
 0x270   :  { %v1457_v33 = vsel %vm1456_vm4, %v1455_v30, %v1452_v32 }
 0x271   :  { %v1459_v34 = vsel %vm1458_vm5, %v1457_v33, 0.0 }
 0x272   :  { %1461 = vst.msk [vmem:[#allocation5] sm:$0xff] %vm1460_vm6, %v1459_v34 }
 0x273   :  { %1701 = shalt.err (!%p1698_p12)
}
 0x274   :  { %s1702_s30 = scalar_lea.hbm %s1877_s3, 128 }
 0x275   :  { %p1703_p13 = scmp.ne.s32.totalorder %s1877_s3, %s1702_s30  ;;  %p1706_p0 = scmp.lt.u32.totalorder %s1702_s30, %s1877_s3 }
 0x277   :  { %p1708_p1 = pnand %p1706_p0, %p1703_p13 }
 0x279   :  { %1711 = shalt.err (!%p1708_p1)
}
 0x27a   :  { %1471 = dma.vmem_to_hbm [thread:$0]  %s1469_s26, 128, %s1877_s3, [#allocation4]  }
 0x27b   :  { %1714 = dma.done.wait [#allocation4], 128  }
 0x27c   :  { %1715 = vsyncadd [#allocation4], 4294967168 }
 0x27d   :  { %1475 = vsyncpa [#allocation3], 1 }
 0x27e   :  { %1476 = vsyncpa [#allocation4], 1 }

</bundles_post_ra>
